<compile_context>
chip_gen: v7x
topology: tpu7x:2x2x1
jax: 0.10.0
libtpu: 0.0.40
codegen_flags: <defaults>
</compile_context>

<pallas_src>
import functools

import jax
import jax.numpy as jnp
from jax.experimental import pallas as pl
from jax.experimental.pallas import tpu as pltpu


def _round_up(x, m):
    return ((x + m - 1) // m) * m


@functools.lru_cache(maxsize=None)
def _roll_supported() -> bool:
    """Probe once whether pltpu.roll runs (and matches jnp.roll) on this backend."""
    def k(x_ref, o_ref):
        o_ref[...] = pltpu.roll(x_ref[...], 1, axis=1)

    try:
        x = jnp.arange(8 * 128, dtype=jnp.float32).reshape(8, 128)
        got = pl.pallas_call(
            k, out_shape=jax.ShapeDtypeStruct((8, 128), jnp.float32))(x)
        return bool(jnp.array_equal(got, jnp.roll(x, 1, axis=1)))
    except Exception:
        return False


def _tpu_vmem_bytes() -> int:
    try:
        return int(pltpu.get_tpu_info().vmem_capacity_bytes)
    except Exception:
        return 64 * 1024 * 1024  # conservative (v7x per-core VMEM)


def _pick_tile_rows(rows, row_bytes_f32, budget_bytes):
    """Rows per tile: whole thing if it fits, else a multiple of 8 sublanes."""
    fit = max(1, budget_bytes // row_bytes_f32)
    if fit >= rows:
        return rows
    return max(8, (fit // 8) * 8)


def _lane_shift(x, k, hwp, use_roll):
    """out[..., i] = x[..., (i + k) % hwp]; wrapped lanes are masked by caller."""
    k = k % hwp
    if k == 0:
        return x
    if use_roll:
        # jnp.roll semantics: roll(x, hwp - k)[i] == x[(i + k) % hwp]
        return pltpu.roll(x, hwp - k, axis=x.ndim - 1)
    return jnp.concatenate([x[..., k:], x[..., :k]], axis=-1)


def _tv_diff(x, masks, *, p, eps, W, hwp, inv_c, use_roll):
    """x: (..., rows, HWp) f32, masks: (3, HWp) f32.

    p == 2: returns per-element diff, same shape as x.
    p == 1: x must be (C, rows, HWp); returns (rows, HWp) = sqrt(mean_c + eps).
    """
    col_mask = masks[0:1, :]   # 0 on last column & pad lanes (replicate pad)
    row_mask = masks[1:2, :]   # 0 on last row & pad lanes

    x_right = _lane_shift(x, 1, hwp, use_roll)   # one column to the right
    x_down = _lane_shift(x, W, hwp, use_roll)    # one row down

    x_diff = (x - x_right) * col_mask
    y_diff = (x - x_down) * row_mask
    diff = x_diff * x_diff + y_diff * y_diff

    if p == 1:
        valid = masks[2:3, :]                    # zero out pad lanes after +eps/sqrt
        diff = jnp.sqrt(jnp.sum(diff, axis=0) * inv_c + eps) * valid
    return diff


def _tv_none_kernel(mask_ref, x_ref, o_ref, *, p, eps, W, hwp, inv_c, use_roll):
    x = x_ref[...].astype(jnp.float32)
    d = _tv_diff(x, mask_ref[...], p=p, eps=eps, W=W, hwp=hwp,
                 inv_c=inv_c, use_roll=use_roll)
    o_ref[...] = d.astype(o_ref.dtype)


def _tv_reduce_kernel(mask_ref, x_ref, o_ref, acc_ref, *, p, eps, W, hwp,
                      inv_c, use_roll):
    b = pl.program_id(1)

    @pl.when(b == 0)
    def _():
        acc_ref[...] = jnp.zeros_like(acc_ref)

    x = x_ref[...].astype(jnp.float32)
    d = _tv_diff(x, mask_ref[...], p=p, eps=eps, W=W, hwp=hwp,
                 inv_c=inv_c, use_roll=use_roll)
    acc_ref[...] += d                           # lane-dense VPU accumulation

    @pl.when(b == pl.num_programs(1) - 1)
    def _():
        # Sublane-only reduce -> full-lane dense store; the wrapper does the
        # tiny final lane / part reduction.
        o_ref[...] = jnp.sum(acc_ref[...], axis=0, keepdims=True)[None]


def tv_loss(x, *, p=1, reduction="mean", eps=1e-8):
    if p not in {1, 2}:
        raise ValueError("p must be 1 or 2")
    if reduction not in {"mean", "sum", "none"}:
        raise ValueError("reduction must be 'mean', 'sum', or 'none'")

    N, C, H, W = x.shape
    HW = H * W
    HWp = _round_up(HW, 128)
    out_C = 1 if p == 1 else C
    in_dtype = x.dtype
    in_itemsize = jnp.dtype(in_dtype).itemsize
    use_roll = _roll_supported()

    vmem_cap = _tpu_vmem_bytes()
    # f32 bytes allowed for one input tile; the in-kernel working set is ~5-6x.
    tile_budget = max(1 << 20, min(6 << 20, vmem_cap // 12))
    vmem_limit = int(min(vmem_cap * 3 // 4, 12 * tile_budget + (8 << 20)))

    # Lane-dense layout: fold H*W onto lanes, pad to a multiple of 128.
    xf = x.reshape(N, C, HW)
    if HWp != HW:
        xf = jnp.pad(xf, ((0, 0), (0, 0), (0, HWp - HW)))

    # Boundary / validity masks, built once and DMA'd once.
    j = jnp.arange(HWp, dtype=jnp.int32)
    in_bounds = j < HW
    col_ok = jnp.logical_and(in_bounds, (j % W) != (W - 1))
    row_ok = j < (H - 1) * W
    masks = jnp.stack([col_ok, row_ok, in_bounds]).astype(jnp.float32)  # (3, HWp)

    if p == 2:
        # Fully independent per (n, c): rows on sublanes -> dense for any C.
        data = xf.reshape(N * C, HWp)
        rows = N * C
        row_bytes = HWp * 4
    else:
        # Channel reduce over a leading (non-layout) axis, batch on sublanes.
        # One extra XLA transpose pass, traded for dense sublanes when C < 8.
        data = jnp.transpose(xf, (1, 0, 2))              # (C, N, HWp)
        rows = N
        row_bytes = C * HWp * 4

    tile = _pick_tile_rows(rows, row_bytes, tile_budget)
    n_tiles = -(-rows // tile)
    parts = 1
    if reduction != "none" and n_tiles >= 2:
        parts = 2                                        # megacore split on v7x
        n_tiles = _round_up(n_tiles, parts)
    rows_p = n_tiles * tile
    pad_rows = rows_p - rows
    if pad_rows:
        if p == 2:
            data = jnp.pad(data, ((0, pad_rows), (0, 0)))
        else:
            data = jnp.pad(data, ((0, 0), (0, pad_rows), (0, 0)))
    # TODO(synk): very large single images (C*HWp*4 >> VMEM) still need
    # H-tiling with a one-row halo; only row-tiling is implemented here.

    kernel_kwargs = dict(p=p, eps=float(eps), W=W, hwp=HWp, inv_c=1.0 / C,
                         use_roll=use_roll)
    flops = 7 * N * C * HW
    transcendentals = N * HW if p == 1 else 0

    if reduction == "none":
        if p == 2:
            in_spec = pl.BlockSpec((tile, HWp), lambda i: (i, 0))
        else:
            in_spec = pl.BlockSpec((C, tile, HWp), lambda i: (0, i, 0))
        out = pl.pallas_call(
            functools.partial(_tv_none_kernel, **kernel_kwargs),
            out_shape=jax.ShapeDtypeStruct((rows_p, HWp), in_dtype),
            grid=(n_tiles,),
            in_specs=[pl.BlockSpec((3, HWp), lambda i: (0, 0)), in_spec],
            out_specs=pl.BlockSpec((tile, HWp), lambda i: (i, 0)),
            compiler_params=pltpu.CompilerParams(
                dimension_semantics=("parallel",),
                vmem_limit_bytes=vmem_limit),
            cost_estimate=pl.CostEstimate(
                flops=flops, transcendentals=transcendentals,
                bytes_accessed=N * C * HW * in_itemsize
                + N * out_C * HW * in_itemsize),
        )(masks, data)
        valid_rows = N * C if p == 2 else N
        return out[:valid_rows, :HW].reshape(N, out_C, H, W)

    # reduction == 'mean' or 'sum'
    n_inner = n_tiles // parts
    if p == 2:
        in_spec = pl.BlockSpec((tile, HWp), lambda c, b: (c * n_inner + b, 0))
    else:
        in_spec = pl.BlockSpec((C, tile, HWp),
                               lambda c, b: (0, c * n_inner + b, 0))
    partials = pl.pallas_call(
        functools.partial(_tv_reduce_kernel, **kernel_kwargs),
        out_shape=jax.ShapeDtypeStruct((parts, 1, HWp), jnp.float32),
        grid=(parts, n_inner),
        in_specs=[pl.BlockSpec((3, HWp), lambda c, b: (0, 0)), in_spec],
        out_specs=pl.BlockSpec((1, 1, HWp), lambda c, b: (c, 0, 0)),
        scratch_shapes=[pltpu.VMEM((tile, HWp), jnp.float32)],
        compiler_params=pltpu.CompilerParams(
            dimension_semantics=("parallel", "arbitrary"),
            vmem_limit_bytes=vmem_limit),
        cost_estimate=pl.CostEstimate(
            flops=flops, transcendentals=transcendentals,
            bytes_accessed=N * C * HW * in_itemsize + parts * HWp * 4),
    )(masks, data)

    total = jnp.sum(partials)
    if p == 1 and pad_rows:
        # zero-padded batch entries contribute sqrt(eps) per valid pixel
        total = total - jnp.sqrt(jnp.float32(eps)) * jnp.float32(pad_rows * HW)
    if reduction == "mean":
        total = total / jnp.float32(N * out_C * H * W)
    return total.astype(in_dtype)


def tv_loss_ref(x, *, p=1, reduction="mean", eps=1e-8):
    """Pure-JAX reference mirroring the PyTorch forward."""
    x = x.astype(jnp.float32)
    xp = jnp.pad(x, ((0, 0), (0, 0), (0, 1), (0, 1)), mode="edge")
    x_diff = xp[..., :-1, :-1] - xp[..., :-1, 1:]
    y_diff = xp[..., :-1, :-1] - xp[..., 1:, :-1]
    diff = x_diff ** 2 + y_diff ** 2
    if p == 1:
        diff = jnp.sqrt(jnp.mean(diff + eps, axis=1, keepdims=True))
    if reduction == "mean":
        return diff.mean()
    if reduction == "sum":
        return diff.sum()
    return diff


if __name__ == "__main__":
    key = jax.random.PRNGKey(0)
    x = jax.random.normal(key, (2, 4, 16, 16), dtype=jnp.float32)

    # primary path: p=1, reduction='mean' (typical TVLoss use)
    out = jax.block_until_ready(tv_loss(x, p=1, reduction="mean", eps=1e-8))
    ref = tv_loss_ref(x, p=1, reduction="mean", eps=1e-8)
    assert jnp.allclose(out, ref, rtol=1e-5, atol=1e-6), (out, ref)

    # p=2 / sum
    out2 = jax.block_until_ready(tv_loss(x, p=2, reduction="sum"))
    ref2 = tv_loss_ref(x, p=2, reduction="sum")
    assert jnp.allclose(out2, ref2, rtol=1e-5, atol=1e-5), (out2, ref2)

    # p=1 / none
    out3 = jax.block_until_ready(tv_loss(x, p=1, reduction="none"))
    ref3 = tv_loss_ref(x, p=1, reduction="none")
    assert out3.shape == (2, 1, 16, 16)
    assert jnp.allclose(out3, ref3, rtol=1e-5, atol=1e-6)

    # p=2 / none
    out4 = jax.block_until_ready(tv_loss(x, p=2, reduction="none"))
    ref4 = tv_loss_ref(x, p=2, reduction="none")
    assert out4.shape == (2, 4, 16, 16)
    assert jnp.allclose(out4, ref4, rtol=1e-5, atol=1e-5)

    print("KERNEL_OK")
</pallas_src>

<mosaic_0001>
module attributes {stable_mosaic.version = 11 : i64} {
  func.func @k(%arg0: memref<8x128xf32, #tpu.memory_space<vmem>>, %arg1: memref<8x128xf32, #tpu.memory_space<vmem>>) attributes {dimension_semantics = [], scalar_prefetch = 0 : i64, scratch_operands = 0 : i64, tpu.core_type = #tpu.core_type<tc>} {
    %c0 = arith.constant 0 : index
    %c0_0 = arith.constant 0 : index
    %0 = vector.load %arg0[%c0, %c0_0] : memref<8x128xf32, #tpu.memory_space<vmem>>, vector<8x128xf32>
    %c1_i32 = arith.constant 1 : i32
    %1 = tpu.dynamic_rotate %0 by %c1_i32 dim 1 : vector<8x128xf32>, i32 -> vector<8x128xf32>
    %c0_1 = arith.constant 0 : index
    %c0_2 = arith.constant 0 : index
    %2 = vector.load %arg1[%c0_1, %c0_2] : memref<8x128xf32, #tpu.memory_space<vmem>>, vector<8x128xf32>
    tpu.vector_store %arg1[%c0_1, %c0_2], %1 {strides = array<i32>} : memref<8x128xf32, #tpu.memory_space<vmem>>, vector<8x128xf32>,
    return
  }
}

module attributes {stable_mosaic.version = 11 : i64} {
  func.func @_tv_reduce_kernel(%arg0: i32, %arg1: i32, %arg2: memref<3x256xf32, #tpu.memory_space<vmem>>, %arg3: memref<4x2x256xf32, #tpu.memory_space<vmem>>, %arg4: memref<1x1x256xf32, #tpu.memory_space<vmem>>, %arg5: memref<2x256xf32, #tpu.memory_space<vmem>>) attributes {dimension_semantics = [#tpu.dimension_semantics<parallel>, #tpu.dimension_semantics<arbitrary>], iteration_bounds = array<i64: 1, 1>, scalar_prefetch = 0 : i64, scratch_operands = 1 : i64, tpu.core_type = #tpu.core_type<tc>, window_params = [{pipeline_mode = #tpu.pipeline_mode<synchronous>, transform_indices = @transform_0, window_bounds = array<i64: 3, 256>}, {transform_indices = @transform_1, window_bounds = array<i64: 4, 2, 256>}, {transform_indices = @transform_2, window_bounds = array<i64: 1, 1, 256>}]} {
    %c0_i32 = arith.constant 0 : i32
    %0 = arith.cmpi eq, %arg1, %c0_i32 : i32
    %1 = arith.extui %0 : i1 to i32
    %c0_i32_0 = arith.constant 0 : i32
    %2 = arith.cmpi ne, %1, %c0_i32_0 : i32
    scf.if %2 {
      %cst_13 = arith.constant 0.000000e+00 : f32
      %39 = vector.broadcast %cst_13 : f32 to vector<2x256xf32>
      %c0_14 = arith.constant 0 : index
      %c0_15 = arith.constant 0 : index
      %40 = vector.load %arg5[%c0_14, %c0_15] : memref<2x256xf32, #tpu.memory_space<vmem>>, vector<2x256xf32>
      tpu.vector_store %arg5[%c0_14, %c0_15], %39 {strides = array<i32>} : memref<2x256xf32, #tpu.memory_space<vmem>>, vector<2x256xf32>,
    } else {
    }
    %c0 = arith.constant 0 : index
    %c0_1 = arith.constant 0 : index
    %c0_2 = arith.constant 0 : index
    %3 = vector.load %arg3[%c0, %c0_1, %c0_2] : memref<4x2x256xf32, #tpu.memory_space<vmem>>, vector<4x2x256xf32>
    %c0_3 = arith.constant 0 : index
    %c0_4 = arith.constant 0 : index
    %4 = vector.load %arg2[%c0_3, %c0_4] : memref<3x256xf32, #tpu.memory_space<vmem>>, vector<3x256xf32>
    %5 = vector.extract_strided_slice %4 {offsets = [0, 0], sizes = [1, 256], strides = [1, 1]} : vector<3x256xf32> to vector<1x256xf32>
    %6 = vector.extract_strided_slice %4 {offsets = [1, 0], sizes = [1, 256], strides = [1, 1]} : vector<3x256xf32> to vector<1x256xf32>
    %7 = vector.extract_strided_slice %3 {offsets = [0, 0, 1], sizes = [4, 2, 255], strides = [1, 1, 1]} : vector<4x2x256xf32> to vector<4x2x255xf32>
    %8 = vector.extract_strided_slice %3 {offsets = [0, 0, 0], sizes = [4, 2, 1], strides = [1, 1, 1]} : vector<4x2x256xf32> to vector<4x2x1xf32>
    %9 = tpu.concatenate %7, %8 in 2 : vector<4x2x255xf32>, vector<4x2x1xf32> -> vector<4x2x256xf32>
    %10 = vector.extract_strided_slice %3 {offsets = [0, 0, 16], sizes = [4, 2, 240], strides = [1, 1, 1]} : vector<4x2x256xf32> to vector<4x2x240xf32>
    %11 = vector.extract_strided_slice %3 {offsets = [0, 0, 0], sizes = [4, 2, 16], strides = [1, 1, 1]} : vector<4x2x256xf32> to vector<4x2x16xf32>
    %12 = tpu.concatenate %10, %11 in 2 : vector<4x2x240xf32>, vector<4x2x16xf32> -> vector<4x2x256xf32>
    %13 = arith.subf %3, %9 : vector<4x2x256xf32>
    %14 = vector.shape_cast %5 : vector<1x256xf32> to vector<1x1x256xf32>
    %15 = vector.broadcast %14 : vector<1x1x256xf32> to vector<4x2x256xf32>
    %16 = arith.mulf %13, %15 : vector<4x2x256xf32>
    %17 = arith.subf %3, %12 : vector<4x2x256xf32>
    %18 = vector.shape_cast %6 : vector<1x256xf32> to vector<1x1x256xf32>
    %19 = vector.broadcast %18 : vector<1x1x256xf32> to vector<4x2x256xf32>
    %20 = arith.mulf %17, %19 : vector<4x2x256xf32>
    %21 = arith.mulf %16, %16 : vector<4x2x256xf32>
    %22 = arith.mulf %20, %20 : vector<4x2x256xf32>
    %23 = arith.addf %21, %22 : vector<4x2x256xf32>
    %24 = vector.extract_strided_slice %4 {offsets = [2, 0], sizes = [1, 256], strides = [1, 1]} : vector<3x256xf32> to vector<1x256xf32>
    %cst = arith.constant dense<0.000000e+00> : vector<2x256xf32>
    %25 = vector.multi_reduction <add>, %23, %cst [0] : vector<4x2x256xf32> to vector<2x256xf32>
    %cst_5 = arith.constant 2.500000e-01 : f32
    %26 = vector.broadcast %cst_5 : f32 to vector<2x256xf32>
    %27 = arith.mulf %25, %26 : vector<2x256xf32>
    %cst_6 = arith.constant 9.99999993E-9 : f32
    %28 = vector.broadcast %cst_6 : f32 to vector<2x256xf32>
    %29 = arith.addf %27, %28 : vector<2x256xf32>
    %30 = math.sqrt %29 : vector<2x256xf32>
    %31 = vector.broadcast %24 : vector<1x256xf32> to vector<2x256xf32>
    %32 = arith.mulf %30, %31 : vector<2x256xf32>
    %c0_7 = arith.constant 0 : index
    %c0_8 = arith.constant 0 : index
    %33 = vector.load %arg5[%c0_7, %c0_8] : memref<2x256xf32, #tpu.memory_space<vmem>>, vector<2x256xf32>
    %34 = arith.addf %33, %32 : vector<2x256xf32>
    %c0_9 = arith.constant 0 : index
    %c0_10 = arith.constant 0 : index
    %35 = vector.load %arg5[%c0_9, %c0_10] : memref<2x256xf32, #tpu.memory_space<vmem>>, vector<2x256xf32>
    tpu.vector_store %arg5[%c0_9, %c0_10], %34 {strides = array<i32>} : memref<2x256xf32, #tpu.memory_space<vmem>>, vector<2x256xf32>,
    %c0_i32_11 = arith.constant 0 : i32
    %36 = arith.cmpi eq, %arg1, %c0_i32_11 : i32
    %37 = arith.extui %36 : i1 to i32
    %c0_i32_12 = arith.constant 0 : i32
    %38 = arith.cmpi ne, %37, %c0_i32_12 : i32
    scf.if %38 {
      %c0_13 = arith.constant 0 : index
      %c0_14 = arith.constant 0 : index
      %39 = vector.load %arg5[%c0_13, %c0_14] : memref<2x256xf32, #tpu.memory_space<vmem>>, vector<2x256xf32>
      %cst_15 = arith.constant dense<0.000000e+00> : vector<256xf32>
      %40 = vector.multi_reduction <add>, %39, %cst_15 [0] : vector<2x256xf32> to vector<256xf32>
      %41 = vector.shape_cast %40 : vector<256xf32> to vector<1x256xf32>
      %42 = vector.shape_cast %41 : vector<1x256xf32> to vector<1x1x256xf32>
      %c0_16 = arith.constant 0 : index
      %c0_17 = arith.constant 0 : index
      %c0_18 = arith.constant 0 : index
      %43 = vector.load %arg4[%c0_16, %c0_17, %c0_18] : memref<1x1x256xf32, #tpu.memory_space<vmem>>, vector<1x1x256xf32>
      tpu.vector_store %arg4[%c0_16, %c0_17, %c0_18], %42 {strides = array<i32>} : memref<1x1x256xf32, #tpu.memory_space<vmem>>, vector<1x1x256xf32>,
    } else {
    }
    return
  }
  func.func @transform_0(%arg0: i32, %arg1: i32) -> (i32, i32) {
    %c0_i32 = arith.constant 0 : i32
    %c0_i32_0 = arith.constant 0 : i32
    %c0_i32_1 = arith.constant 0 : i32
    return %c0_i32, %c0_i32_0 : i32, i32
  }
  func.func @transform_1(%arg0: i32, %arg1: i32) -> (i32, i32, i32) {
    %c1_i32 = arith.constant 1 : i32
    %0 = arith.muli %arg0, %c1_i32 : i32
    %1 = arith.addi %0, %arg1 : i32
    %c0_i32 = arith.constant 0 : i32
    %c0_i32_0 = arith.constant 0 : i32
    %c0_i32_1 = arith.constant 0 : i32
    return %c0_i32, %1, %c0_i32_0 : i32, i32, i32
  }
  func.func @transform_2(%arg0: i32, %arg1: i32) -> (i32, i32, i32) {
    %c0_i32 = arith.constant 0 : i32
    %c0_i32_0 = arith.constant 0 : i32
    %c0_i32_1 = arith.constant 0 : i32
    return %arg0, %c0_i32, %c0_i32_0 : i32, i32, i32
  }
}

</mosaic_0001>

<bundles_post_ra>
// kernel: tpu_custom_call.1
= control target key start
LH: loop header
LB: loop body
LE: loop exit
PB: predicated region body
PF: predicated region fallthrough
CT: control target
= control target key end

     0   :  { %6 = vsyncpa [#allocation3], 0  ;;  %s128_s0 = inlined_call_operand.hbm [shape: f32[8,128], index: 0, kind: input, shape index: {}]   ;;  %s129_s1 = inlined_call_operand.hbm [shape: f32[8,128], index: 1, kind: output, shape index: {}]  }
   0x1   :  { %7 = vsyncpa [#allocation4], 0  ;;  %s91_s6 = smov [#allocation2]   ;;  %s43_s10 = scalar_lea.hbm %s128_s0, 128 }
   0x2   :  { %s14_s7 = sshll.u32 %s91_s6, 4  ;;  %p44_p0 = scmp.ne.s32.totalorder %s128_s0, %s43_s10  ;;  %s15_s7 = int_to_ptr.vmem [resolvable:$true] %s14_s7 }
   0x3   :  { %p47_p1 = scmp.lt.u32.totalorder %s43_s10, %s128_s0 }
   0x5   :  { %p49_p2 = pnand %p47_p1, %p44_p0 }
   0x7   :  { %52 = shalt.err (!%p49_p2)
}
   0x8   :  { %s53_s15 = scalar_lea.vmem %s15_s7, 128  ;;  %p58_p4 = scmp.lt.s32.totalorder %s15_s7, %s15_s7 }
   0x9   :  { %p54_p3 = scmp.ne.s32.totalorder %s15_s7, %s53_s15  ;;  %p59_p5 = scmp.lt.s32.totalorder %s53_s15, %s53_s15 }
   0xb   :  { %p60_p6 = por %p59_p5, %p58_p4 }
   0xd   :  { %p61_p7 = pnand %p60_p6, %p54_p3 }
   0xf   :  { %64 = shalt.err (!%p61_p7)
}
  0x10   :  { %17 = dma.hbm_to_vmem [thread:$0]  %s128_s0, 128, %s15_s7, [#allocation3]  }
  0x11   :  { %87 = dma.done.wait [#allocation3], 128  }
  0x12   :  { %88 = vsyncadd [#allocation3], 4294967168  ;;  %v21_v0 = vld [vmem:[#allocation2] sm:$0xff]  ;;  %s92_s18 = smov 1   ;;  %s93_s19 = smov [#allocation5]  }
  0x13   :  { %22 = vrot.lane.b32.xlu0 %v21_v0, %s92_s18  ;;  %s31_s20 = sshll.u32 %s93_s19, 4  ;;  %s32_s20 = int_to_ptr.vmem [resolvable:$true] %s31_s20 }
  0x14   :  { %s65_s21 = scalar_lea.vmem %s32_s20, 128  ;;  %p70_p9 = scmp.lt.s32.totalorder %s32_s20, %s32_s20 }
  0x15   :  { %p66_p8 = scmp.ne.s32.totalorder %s32_s20, %s65_s21  ;;  %p71_p10 = scmp.lt.s32.totalorder %s65_s21, %s65_s21 }
  0x17   :  { %p72_p11 = por %p71_p10, %p70_p9 }
  0x19   :  { %p73_p12 = pnand %p72_p11, %p66_p8 }
  0x85   :  { %v23_v1 = vpop.permute.xlu0 %22 }
  0x86   :  { %24 = vst [vmem:[#allocation5] sm:$0xff] %v23_v1 }
  0x87   :  { %76 = shalt.err (!%p73_p12)
}
  0x88   :  { %s77_s0 = scalar_lea.hbm %s129_s1, 128 }
  0x89   :  { %p78_p13 = scmp.ne.s32.totalorder %s129_s1, %s77_s0  ;;  %p81_p0 = scmp.lt.u32.totalorder %s77_s0, %s129_s1 }
  0x8b   :  { %p83_p1 = pnand %p81_p0, %p78_p13 }
  0x8d   :  { %86 = shalt.err (!%p83_p1)
}
  0x8e   :  { %34 = dma.vmem_to_hbm [thread:$0]  %s32_s20, 128, %s129_s1, [#allocation4]  }
  0x8f   :  { %89 = dma.done.wait [#allocation4], 128  }
  0x90   :  { %90 = vsyncadd [#allocation4], 4294967168 }
  0x91   :  { %38 = vsyncpa [#allocation3], 1 }
  0x92   :  { %39 = vsyncpa [#allocation4], 1 }

// kernel: tpu_custom_call.1
= control target key start
LH: loop header
LB: loop body
LE: loop exit
PB: predicated region body
PF: predicated region fallthrough
CT: control target
= control target key end

     0   :  { %7 = vsyncpa [#allocation4], 0  ;;  %s743_s0 = inlined_call_operand.hbm [shape: f32[3,256], index: 0, kind: input, shape index: {}]   ;;  %s744_s1 = inlined_call_operand.hbm [shape: f32[4,2,256], index: 1, kind: input, shape index: {}]   ;;  %s745_s2 = inlined_call_operand.hbm [shape: f32[1,1,256], index: 2, kind: output, shape index: {}]  }
   0x1   :  { %8 = vsyncpa [#allocation7], 0 }
   0x2   :  { %9 = vsyncpa [#allocation5], 0  ;;  %s588_s9 = smov [#allocation3]   ;;  %s589_s11 = smov [#allocation6]  }
   0x3   :  { %s16_s10 = sshll.u32 %s588_s9, 4  ;;  %s29_s12 = sshll.u32 %s589_s11, 4  ;;  %s17_s10 = int_to_ptr.vmem [resolvable:$true] %s16_s10  ;;  %s613_s12 = int_to_ptr.vmem [resolvable:$true] %s29_s12 }
   0x4   :  { %s516_s15 = scalar_lea.hbm %s743_s0, 128 }
   0x5   :  { %p517_p0 = scmp.ne.s32.totalorder %s743_s0, %s516_s15  ;;  %p520_p1 = scmp.lt.u32.totalorder %s516_s15, %s743_s0 }
   0x7   :  { %p522_p2 = pnand %p520_p1, %p517_p0 }
   0x9   :  { %525 = shalt.err (!%p522_p2)
}
   0xa   :  { %s526_s20 = scalar_lea.vmem %s17_s10, 128  ;;  %p531_p4 = scmp.lt.s32.totalorder %s17_s10, %s17_s10 }
   0xb   :  { %p527_p3 = scmp.ne.s32.totalorder %s17_s10, %s526_s20  ;;  %p532_p5 = scmp.lt.s32.totalorder %s526_s20, %s526_s20 }
   0xd   :  { %p533_p6 = por %p532_p5, %p531_p4 }
   0xf   :  { %p534_p7 = pnand %p533_p6, %p527_p3 }
  0x11   :  { %537 = shalt.err (!%p534_p7)
}
  0x12   :  { %19 = dma.hbm_to_vmem [thread:$0]  %s743_s0, 128, %s17_s10, [#allocation4]  }
  0x13   :  { %s538_s25 = scalar_lea.hbm %s744_s1, 256 }
  0x14   :  { %p539_p8 = scmp.ne.s32.totalorder %s744_s1, %s538_s25  ;;  %p542_p9 = scmp.lt.u32.totalorder %s538_s25, %s744_s1 }
  0x16   :  { %p544_p10 = pnand %p542_p9, %p539_p8 }
  0x18   :  { %547 = shalt.err (!%p544_p10)
}
  0x19   :  { %s548_s30 = scalar_lea.vmem %s613_s12, 256  ;;  %p553_p12 = scmp.lt.s32.totalorder %s613_s12, %s613_s12 }
  0x1a   :  { %p549_p11 = scmp.ne.s32.totalorder %s613_s12, %s548_s30  ;;  %p554_p13 = scmp.lt.s32.totalorder %s548_s30, %s548_s30 }
  0x1c   :  { %p555_p0 = por %p554_p13, %p553_p12 }
  0x1e   :  { %p556_p1 = pnand %p555_p0, %p549_p11 }
  0x20   :  { %559 = shalt.err (!%p556_p1)
}
  0x21   :  { %s590_s0 = smov 64   ;;  %s591_s3 = smov 4  }
  0x22   :  { %35 = dma.hbm_to_vmem [thread:$0]  %s744_s1, 256, %s613_s12, [#allocation7], %s590_s0, %s590_s0, %s591_s3  }
  0x23   :  { %582 = dma.done.wait [#allocation4], 128  }
  0x24   :  { %583 = vsyncadd [#allocation4], 4294967168 }
  0x25   :  { %584 = dma.done.wait [#allocation7], 256  }
  0x26   :  { %585 = vsyncadd [#allocation7], 4294967040  ;;  %v60_v0 = vlaneseq  ;;  %v592_v1 = vmov 0.0   ;;  %v593_v2 = vmov 1983009808   ;;  %s594_s1 = smov 127  }
  0x27   :  { %47 = vst [vmem:[#allocation2] sm:$0xf] %v592_v1  ;;  %v58_v3 = vunpack.c.l.s4 %v593_v2  ;;  %v650_v7 = vld [vmem:[#allocation6 + $0x4] sm:$0xf]  ;;  %v652_v8 = vld [vmem:[#allocation6] sm:$0xf] }
  0x28   :  { %v645_v4 = vshrl.u32 %v60_v0, 7  ;;  %s595_s6 = smov 112   ;;  %v658_v13 = vld [vmem:[#allocation6 + $0x8] sm:$0xf]  ;;  %v662_v16 = vld [vmem:[#allocation6 + $0xc] sm:$0xf] }
  0x29   :  { %v59_v5 = vunpack.c.0.s8 %v58_v3  ;;  %v670_v25 = vld [vmem:[#allocation3] sm:$0x77]  ;;  %vm105_vm0 = vcmask 1039360   ;;  %vm138_vm1 = vcmask 916480   ;;  %vm366_vm2 = vcmask 1041408   ;;  %s597_s7 = smov [#allocation8]  }
  0x2a   :  { %v202_v21 = vsub.s32 0, %v645_v4  ;;  %v206_v22 = vsub.s32 4, %v645_v4  ;;  %v279_v23 = vsub.s32 1, %v645_v4  ;;  %v283_v24 = vsub.s32 5, %v645_v4  ;;  %s491_s8 = sshll.u32 %s597_s7, 4  ;;  %s492_s8 = int_to_ptr.vmem [resolvable:$true] %s491_s8 }
  0x2b   :  { %v648_v6 = vsub.s32 %v59_v5, %v645_v4  ;;  %vm482_vm7 = vcmp.lt.s32.totalorder %v60_v0, 256  ;;  %s560_s9 = scalar_lea.vmem %s492_s8, 32  ;;  %p565_p3 = scmp.lt.s32.totalorder %s492_s8, %s492_s8 }
  0x2c   :  { %v203_v26 = vrot.slane %v670_v25, %v202_v21  ;;  %v207_v27 = vrot.slane %v670_v25, %v206_v22  ;;  %v280_v30 = vrot.slane %v670_v25, %v279_v23  ;;  %v284_v31 = vrot.slane %v670_v25, %v283_v24  ;;  %p561_p2 = scmp.ne.s32.totalorder %s492_s8, %s560_s9  ;;  %p566_p4 = scmp.lt.s32.totalorder %s560_s9, %s560_s9 }
  0x2d   :  { %v71_v9 = vrot.slane %v650_v7, %v648_v6  ;;  %v63_v10 = vrot.slane %v652_v8, %v648_v6  ;;  %v79_v14 = vrot.slane %v658_v13, %v648_v6  ;;  %v87_v17 = vrot.slane %v662_v16, %v648_v6 }
  0x2e   :  { %v213_v34 = vrot.slane %v203_v26, %v202_v21  ;;  %v217_v35 = vrot.slane %v207_v27, %v202_v21  ;;  %v290_v37 = vrot.slane %v280_v30, %v279_v23  ;;  %v294_v38 = vrot.slane %v284_v31, %v279_v23  ;;  %p567_p5 = por %p566_p4, %p565_p3 }
  0x2f   :  { %93 = vrot.lane.b32.xlu1 %v71_v9, %s594_s1  ;;  %89 = vrot.lane.b32.xlu0 %v63_v10, %s594_s1  ;;  %v72_v11 = vcombine.high %v71_v9, %v71_v9  ;;  %v64_v12 = vcombine.high %v63_v10, %v63_v10  ;;  %v80_v15 = vcombine.high %v79_v14, %v79_v14 }
  0x30   :  { %v88_v18 = vcombine.high %v87_v17, %v87_v17  ;;  %v220_v44 = vcombine.low %v213_v34, %v217_v35  ;;  %v297_v45 = vcombine.low %v290_v37, %v294_v38  ;;  %p568_p6 = pnand %p567_p5, %p561_p2 }
  0x32   :  { %v227_v60 = vrot.slane %v220_v44, %v648_v6  ;;  %v304_v61 = vrot.slane %v297_v45, %v648_v6 }
  0x33   :  { %95 = vrot.lane.b32.xlu1 %v72_v11, %s594_s1  ;;  %122 = vrot.lane.b32.xlu0 %v63_v10, %s595_s6 }
  0x37   :  { %126 = vrot.lane.b32.xlu0 %v71_v9, %s595_s6  ;;  %124 = vrot.lane.b32.xlu1 %v64_v12, %s595_s6 }
  0x3b   :  { %128 = vrot.lane.b32.xlu1 %v72_v11, %s595_s6  ;;  %91 = vrot.lane.b32.xlu0 %v64_v12, %s594_s1 }
  0x3f   :  { %99 = vrot.lane.b32.xlu1 %v80_v15, %s594_s1  ;;  %97 = vrot.lane.b32.xlu0 %v79_v14, %s594_s1 }
  0x43   :  { %132 = vrot.lane.b32.xlu1 %v80_v15, %s595_s6  ;;  %130 = vrot.lane.b32.xlu0 %v79_v14, %s595_s6 }
  0x47   :  { %103 = vrot.lane.b32.xlu1 %v88_v18, %s594_s1  ;;  %101 = vrot.lane.b32.xlu0 %v87_v17, %s594_s1 }
  0x4b   :  { %136 = vrot.lane.b32.xlu1 %v88_v18, %s595_s6  ;;  %134 = vrot.lane.b32.xlu0 %v87_v17, %s595_s6 }
  0xa1   :  { %v94_v19 = vpop.permute.xlu1 %93  ;;  %v90_v20 = vpop.permute.xlu0 %89 }
  0xa5   :  { %v96_v28 = vpop.permute.xlu1 %95  ;;  %v123_v29 = vpop.permute.xlu0 %122 }
  0xa6   :  { %v107_v32 = vsel %vm105_vm0, %v94_v19, %v96_v28  ;;  %v119_v33 = vsel %vm105_vm0, %v96_v28, %v94_v19 }
  0xa7   :  { %v167_v42 = vcombine.low %v107_v32, %v119_v33 }
  0xa9   :  { %v127_v36 = vpop.permute.xlu0 %126  ;;  %v125_v39 = vpop.permute.xlu1 %124  ;;  %v174_v52 = vrot.slane %v167_v42, %v648_v6 }
  0xaa   :  { %v139_v40 = vsel %vm138_vm1, %v123_v29, %v125_v39  ;;  %v151_v41 = vsel %vm138_vm1, %v125_v39, %v123_v29 }
  0xab   :  { %v237_v43 = vcombine.low %v139_v40, %v151_v41  ;;  %v196_v1 = vsub.f32 %v650_v7, %v174_v52 }
  0xad   :  { %v129_v46 = vpop.permute.xlu1 %128  ;;  %v92_v47 = vpop.permute.xlu0 %91  ;;  %v244_v55 = vrot.slane %v237_v43, %v648_v6  ;;  %v230_v19 = vmul.f32 %v227_v60, %v196_v1 }
  0xae   :  { %v140_v48 = vsel %vm138_vm1, %v127_v36, %v129_v46  ;;  %v152_v49 = vsel %vm138_vm1, %v129_v46, %v127_v36  ;;  %v106_v50 = vsel %vm105_vm0, %v90_v20, %v92_v47  ;;  %v118_v51 = vsel %vm105_vm0, %v92_v47, %v90_v20 }
  0xaf   :  { %v245_v53 = vcombine.low %v140_v48, %v152_v49  ;;  %v159_v54 = vcombine.low %v106_v50, %v118_v51  ;;  %v273_v9 = vsub.f32 %v652_v8, %v244_v55  ;;  %v311_v29 = vmul.f32 %v230_v19, %v230_v19 }
  0xb1   :  { %v252_v56 = vrot.slane %v245_v53, %v648_v6  ;;  %v166_v57 = vrot.slane %v159_v54, %v648_v6  ;;  %v100_v58 = vpop.permute.xlu1 %99  ;;  %v98_v59 = vpop.permute.xlu0 %97  ;;  %v306_v21 = vmul.f32 %v304_v61, %v273_v9 }
  0xb2   :  { %v108_v62 = vsel %vm105_vm0, %v98_v59, %v100_v58  ;;  %v120_v63 = vsel %vm105_vm0, %v100_v58, %v98_v59 }
  0xb3   :  { %v274_v2 = vsub.f32 %v650_v7, %v252_v56  ;;  %v195_v3 = vsub.f32 %v652_v8, %v166_v57  ;;  %v175_v5 = vcombine.low %v108_v62, %v120_v63  ;;  %v314_v31 = vmul.f32 %v306_v21, %v306_v21 }
  0xb4   :  { %v401_v21 = vsub.s32 2, %v645_v4 }
  0xb5   :  { %v307_v10 = vmul.f32 %v304_v61, %v274_v2  ;;  %v182_v11 = vrot.slane %v175_v5, %v648_v6  ;;  %v133_v12 = vpop.permute.xlu1 %132  ;;  %v131_v14 = vpop.permute.xlu0 %130  ;;  %v229_v15 = vmul.f32 %v227_v60, %v195_v3 }
  0xb6   :  { %v141_v17 = vsel %vm138_vm1, %v131_v14, %v133_v12  ;;  %v153_v18 = vsel %vm138_vm1, %v133_v12, %v131_v14 }
  0xb7   :  { %v253_v20 = vcombine.low %v141_v17, %v153_v18  ;;  %v197_v7 = vsub.f32 %v658_v13, %v182_v11  ;;  %v315_v22 = vmul.f32 %v307_v10, %v307_v10  ;;  %v310_v26 = vmul.f32 %v229_v15, %v229_v15 }
  0xb9   :  { %v260_v23 = vrot.slane %v253_v20, %v648_v6  ;;  %v104_v24 = vpop.permute.xlu1 %103  ;;  %v102_v8 = vpop.permute.xlu0 %101  ;;  %v231_v32 = vmul.f32 %v227_v60, %v197_v7  ;;  %v319_v34 = vadd.f32 %v315_v22, %v311_v29  ;;  %v318_v37 = vadd.f32 %v314_v31, %v310_v26 }
  0xba   :  { %v109_v27 = vsel %vm105_vm0, %v102_v8, %v104_v24  ;;  %v121_v28 = vsel %vm105_vm0, %v104_v24, %v102_v8  ;;  %v405_v7 = vsub.s32 6, %v645_v4  ;;  %v402_v22 = vrot.slane %v670_v25, %v401_v21 }
  0xbb   :  { %v275_v30 = vsub.f32 %v658_v13, %v260_v23  ;;  %v183_v33 = vcombine.low %v109_v27, %v121_v28  ;;  %v312_v42 = vmul.f32 %v231_v32, %v231_v32  ;;  %v340_v13 = vrot.slane %v319_v34, %v648_v6 }
  0xbc   :  { %v332_v46 = vrot.slane %v318_v37, %v648_v6  ;;  %v406_v23 = vrot.slane %v670_v25, %v405_v7  ;;  %v412_v27 = vrot.slane %v402_v22, %v401_v21  ;;  %v419_v25 = vld [vmem:[#allocation2] sm:$0xf] }
  0xbd   :  { %v137_v35 = vpop.permute.xlu1 %136  ;;  %v135_v36 = vpop.permute.xlu0 %134  ;;  %v308_v38 = vmul.f32 %v304_v61, %v275_v30  ;;  %v190_v39 = vrot.slane %v183_v33, %v648_v6  ;;  %v341_v52 = vcombine.high %v340_v13, %v340_v13  ;;  %v368_v55 = vsel %vm366_vm2, %v340_v13, 0.0 }
  0xbe   :  { %v142_v40 = vsel %vm138_vm1, %v135_v36, %v137_v35  ;;  %v154_v41 = vsel %vm138_vm1, %v137_v35, %v135_v36  ;;  %v333_v53 = vcombine.high %v332_v46, %v332_v46  ;;  %v367_v56 = vsel %vm366_vm2, %v332_v46, 0.0 }
  0xbf   :  { %v316_v43 = vmul.f32 %v308_v38, %v308_v38  ;;  %v198_v44 = vsub.f32 %v662_v16, %v190_v39  ;;  %v261_v45 = vcombine.low %v142_v40, %v154_v41  ;;  %v375_v62 = vsel %vm366_vm2, %v341_v52, 0.0 }
  0xc0   :  { %v374_v63 = vsel %vm366_vm2, %v333_v53, 0.0  ;;  %v416_v29 = vrot.slane %v406_v23, %v401_v21 }
  0xc1   :  { %v320_v47 = vadd.f32 %v316_v43, %v312_v42  ;;  %v268_v48 = vrot.slane %v261_v45, %v648_v6  ;;  %v232_v50 = vmul.f32 %v227_v60, %v198_v44  ;;  %v369_v60 = vadd.f32 %v368_v55, %v367_v56 }
  0xc3   :  { %v348_v49 = vrot.slane %v320_v47, %v648_v6  ;;  %v276_v51 = vsub.f32 %v662_v16, %v268_v48  ;;  %v313_v58 = vmul.f32 %v232_v50, %v232_v50 }
  0xc5   :  { %v309_v54 = vmul.f32 %v304_v61, %v276_v51  ;;  %v349_v57 = vcombine.high %v348_v49, %v348_v49  ;;  %v370_v1 = vsel %vm366_vm2, %v348_v49, 0.0  ;;  %v376_v61 = vadd.f32 %v375_v62, %v374_v63 }
  0xc6   :  { %v371_v5 = vadd.f32 %v370_v1, %v369_v60  ;;  %v596_v49 = vmov 1966171168  }
  0xc7   :  { %v317_v59 = vmul.f32 %v309_v54, %v309_v54  ;;  %v377_v16 = vsel %vm366_vm2, %v349_v57, 0.0  ;;  %v466_v50 = vunpack.c.l.s4 %v596_v49 }
  0xc8   :  { %v378_v11 = vadd.f32 %v377_v16, %v376_v61 }
  0xc9   :  { %v321_v2 = vadd.f32 %v317_v59, %v313_v58 }
  0xcb   :  { %v356_v3 = vrot.slane %v321_v2, %v648_v6 }
  0xcd   :  { %v357_v9 = vcombine.high %v356_v3, %v356_v3  ;;  %v372_v10 = vsel %vm366_vm2, %v356_v3, 0.0 }
  0xce   :  { %v373_v12 = vadd.f32 %v372_v10, %v371_v5 }
  0xcf   :  { %v379_v14 = vsel %vm366_vm2, %v357_v9, 0.0 }
  0xd0   :  { %v380_v15 = vadd.f32 %v379_v14, %v378_v11  ;;  %v381_v17 = vmul.f32 0.25, %v373_v12 }
  0xd2   :  { %v382_v18 = vmul.f32 0.25, %v380_v15  ;;  %v383_v19 = vadd.f32 1e-08, %v381_v17 }
  0xd4   :  { %v384_v20 = vadd.f32 1e-08, %v382_v18  ;;  %512 = vrsqrt.f32 %v383_v19  ;;  %vm387_vm3 = vcmp.eq.f32.partialorder %v383_v19, inf  ;;  %v390_v28 = vand.u32 2147483648, %v383_v19 }
  0xd5   :  { %vm389_vm4 = vcmp.eq.f32.partialorder %v383_v19, 0.0 }
  0xd6   :  { %514 = vrsqrt.f32 %v384_v20  ;;  %vm394_vm5 = vcmp.eq.f32.partialorder %v384_v20, inf  ;;  %v397_v33 = vand.u32 2147483648, %v384_v20  ;;  %vm396_vm6 = vcmp.eq.f32.partialorder %v384_v20, 0.0 }
  0xde   :  { %v513_v24 = vpop.eup %512 }
  0xdf   :  { %v386_v8 = vmul.f32 %v513_v24, %v383_v19 }
  0xe0   :  { %v515_v26 = vpop.eup %514 }
  0xe1   :  { %v388_v30 = vsel %vm387_vm3, %v383_v19, %v386_v8  ;;  %v393_v31 = vmul.f32 %v515_v26, %v384_v20 }
  0xe2   :  { %v391_v32 = vsel %vm389_vm4, %v390_v28, %v388_v30 }
  0xe3   :  { %v395_v34 = vsel %vm394_vm5, %v384_v20, %v393_v31  ;;  %v417_v36 = vmul.f32 %v412_v27, %v391_v32 }
  0xe4   :  { %v398_v35 = vsel %vm396_vm6, %v397_v33, %v395_v34 }
  0xe5   :  { %v418_v37 = vmul.f32 %v416_v29, %v398_v35 }
  0xe7   :  { %v422_v38 = vcombine.low %v417_v36, %v418_v37 }
  0xe9   :  { %v429_v39 = vrot.slane %v422_v38, %v648_v6  ;;  %v467_v6 = vunpack.c.0.s8 %v466_v50 }
  0xeb   :  { %v431_v40 = vadd.f32 %v429_v39, %v419_v25  ;;  %v470_v58 = vsub.s32 %v467_v6, %v645_v4 }
  0xed   :  { %432 = vst [vmem:[#allocation2] sm:$0xf] %v431_v40 }
  0xf4   :  { %v501_v41 = vld.sshfl [vmem:[#allocation2] sm:$0x33 pattern:$0x76325410] }
  0xf5   :  { %v445_v42 = vcombine.high %v501_v41, %v501_v41  ;;  %v448_v43 = vsel %vm366_vm2, %v501_v41, 0.0 }
  0xf6   :  { %v449_v44 = vrot.slane %v448_v43, 4 }
  0xf7   :  { %v455_v45 = vsel %vm366_vm2, %v445_v42, 0.0 }
  0xf8   :  { %v450_v13 = vadd.f32 %v449_v44, %v448_v43  ;;  %v456_v46 = vrot.slane %v455_v45, 4 }
  0xfa   :  { %v451_v47 = vrot.slane %v450_v13, 2  ;;  %v457_v48 = vadd.f32 %v456_v46, %v455_v45 }
  0xfc   :  { %v452_v51 = vadd.f32 %v451_v47, %v450_v13  ;;  %v458_v52 = vrot.slane %v457_v48, 2 }
  0xfe   :  { %v453_v53 = vrot.slane %v452_v51, 1  ;;  %v459_v54 = vadd.f32 %v458_v52, %v457_v48 }
 0x100   :  { %v460_v55 = vrot.slane %v459_v54, 1  ;;  %v454_v56 = vadd.f32 %v453_v53, %v452_v51 }
 0x102   :  { %v461_v57 = vadd.f32 %v460_v55, %v459_v54 }
 0x104   :  { %v464_v59 = vcombine.low %v454_v56, %v461_v57 }
 0x106   :  { %v471_v62 = vrot.slane %v464_v59, %v470_v58 }
 0x108   :  { %v478_v63 = vrot.slane %v471_v62, %v470_v58 }
 0x10a   :  { %484 = vst.msk [vmem:[#allocation8] sm:$0x3] %vm482_vm7, %v478_v63 }
 0x10b   :  { %571 = shalt.err (!%p568_p6)
}
 0x10c   :  { %s572_s12 = scalar_lea.hbm %s745_s2, 32 }
 0x10d   :  { %p573_p7 = scmp.ne.s32.totalorder %s745_s2, %s572_s12  ;;  %p576_p8 = scmp.lt.u32.totalorder %s572_s12, %s745_s2 }
 0x10f   :  { %p578_p9 = pnand %p576_p8, %p573_p7 }
 0x111   :  { %581 = shalt.err (!%p578_p9)
}
 0x112   :  { %494 = dma.vmem_to_hbm [thread:$0]  %s492_s8, 32, %s745_s2, [#allocation5]  }
 0x113   :  { %586 = dma.done.wait [#allocation5], 32  }
 0x114   :  { %587 = vsyncadd [#allocation5], 4294967264 }
 0x115   :  { %498 = vsyncpa [#allocation4], 1 }
 0x116   :  { %499 = vsyncpa [#allocation7], 1 }
 0x117   :  { %500 = vsyncpa [#allocation5], 1 }

</bundles_post_ra>
